<compile_context>
chip_gen: v6e
topology: v6e:2x2x1
jax: 0.10.0
libtpu: 0.0.40
codegen_flags: <defaults>
</compile_context>

<pallas_src>
import math
import functools

import jax
import jax.numpy as jnp
from jax import lax
from jax.experimental import pallas as pl
from jax.experimental.pallas import tpu as pltpu


def _pick_tile(dim, target, step):
    """Largest multiple of `step` <= target that evenly divides `dim`.

    Falls back to the full dim (always a legal block shape)."""
    if dim <= target:
        return dim
    t = (target // step) * step
    while t >= step:
        if dim % t == 0:
            return t
        t -= step
    return dim


# ---------------------------------------------------------------------------
# Kernel 1: tiled Conv1D  (y = x @ W + b)
#   grid = (M/tm, N/tn, K/tk); K is the reduction axis ("arbitrary") with an f32
#   VMEM accumulator, M/N are "parallel" (megacore-shardable).
# ---------------------------------------------------------------------------
def _linear_kernel(x_ref, w_ref, b_ref, o_ref, acc_ref, *, mxu_dtype):
    kk = pl.program_id(2)

    @pl.when(kk == 0)
    def _():
        acc_ref[...] = jnp.zeros_like(acc_ref)

    x = x_ref[...]
    w = w_ref[...]
    if mxu_dtype is not None:
        x = x.astype(mxu_dtype)
        w = w.astype(mxu_dtype)
    acc_ref[...] += jnp.dot(x, w, preferred_element_type=jnp.float32)

    @pl.when(kk == pl.num_programs(2) - 1)
    def _():
        o_ref[...] = (acc_ref[...] + b_ref[...].astype(jnp.float32)).astype(o_ref.dtype)


def conv1d(x2d, w, b, *, mxu_dtype=None, tm=256, tn=256, tk=512):
    """x2d: (M, K), w: (K, N), b: (N,) -> (M, N)."""
    M, K = x2d.shape
    N = w.shape[1]
    btm = _pick_tile(M, tm, 8)      # sublane dim of x / out blocks
    btn = _pick_tile(N, tn, 128)    # lane dim of w / out blocks
    btk = _pick_tile(K, tk, 128)    # lane dim of x block, sublane dim of w block

    return pl.pallas_call(
        functools.partial(_linear_kernel, mxu_dtype=mxu_dtype),
        out_shape=jax.ShapeDtypeStruct((M, N), x2d.dtype),
        grid=(M // btm, N // btn, K // btk),
        in_specs=[
            pl.BlockSpec((btm, btk), lambda i, j, k: (i, k)),
            pl.BlockSpec((btk, btn), lambda i, j, k: (k, j)),
            pl.BlockSpec((1, btn), lambda i, j, k: (0, j)),
        ],
        out_specs=pl.BlockSpec((btm, btn), lambda i, j, k: (i, j)),
        scratch_shapes=[pltpu.VMEM((btm, btn), jnp.float32)],
        compiler_params=pltpu.CompilerParams(
            dimension_semantics=("parallel", "parallel", "arbitrary"),
            vmem_limit_bytes=32 * 1024 * 1024,
        ),
    )(x2d, w, b.reshape(1, N))


# ---------------------------------------------------------------------------
# Kernel 2: flash-style causal attention with the output projection fused in.
#   grid = (B, T/tq, H, T/tk); the output block (b, q_tile) stays resident across the
#   trailing "arbitrary" (head, kv) axes and accumulates sum_h (o_h @ W_proj[h]).
# ---------------------------------------------------------------------------
def _flash_attn_proj_kernel(q_ref, k_ref, v_ref, wp_ref, bp_ref, o_ref,
                            m_sc, l_sc, acc_sc, proj_sc,
                            *, tq, tk, scale, mxu_dtype, approx_recip):
    qi = pl.program_id(1)
    h = pl.program_id(2)
    kv = pl.program_id(3)
    n_h = pl.num_programs(2)
    n_kv = pl.num_programs(3)

    # --- init the fused c_proj accumulator once per (b, q_tile) output block ---
    @pl.when(jnp.logical_and(h == 0, kv == 0))
    def _():
        proj_sc[...] = jnp.zeros_like(proj_sc)

    # --- init the online-softmax state once per head ---
    @pl.when(kv == 0)
    def _():
        m_sc[...] = jnp.full_like(m_sc, -jnp.inf)
        l_sc[...] = jnp.zeros_like(l_sc)
        acc_sc[...] = jnp.zeros_like(acc_sc)

    row0 = qi * tq        # global index of the first query row in this tile
    col0 = kv * tk        # global index of the first key column in this tile

    def _update(apply_mask):
        q = q_ref[...].astype(jnp.float32)
        if scale:
            # fold 1/sqrt(d) into q (T*d multiplies instead of T*T divides)
            q = q * jnp.float32(1.0 / math.sqrt(q_ref.shape[-1]))
        k = k_ref[...]
        if mxu_dtype is not None:
            q = q.astype(mxu_dtype)
            k = k.astype(mxu_dtype)
        # q:(tq,d) . k:(tk,d)^T -> (tq,tk); contraction on d (MXU handles transpose)
        s = lax.dot_general(q, k, (((1,), (1,)), ((), ())),
                            preferred_element_type=jnp.float32)
        if apply_mask:  # only the diagonal-crossing tiles pay for the iota mask
            row = row0 + lax.broadcasted_iota(jnp.int32, (tq, tk), 0)
            col = col0 + lax.broadcasted_iota(jnp.int32, (tq, tk), 1)
            s = jnp.where(col <= row, s, jnp.float32(-10000.0))   # masked_bias

        m_prev = m_sc[...]
        m_new = jnp.maximum(m_prev, jnp.max(s, axis=-1, keepdims=True))
        alpha = jnp.exp(m_prev - m_new)
        p = jnp.exp(s - m_new)
        l_sc[...] = alpha * l_sc[...] + jnp.sum(p, axis=-1, keepdims=True)

        v = v_ref[...]
        pv_dtype = v.dtype if mxu_dtype is None else mxu_dtype
        acc_sc[...] = alpha * acc_sc[...] + jnp.dot(
            p.astype(pv_dtype), v.astype(pv_dtype),
            preferred_element_type=jnp.float32)
        m_sc[...] = m_new

    # Fully-visible tile (strictly below the diagonal): no mask work at all.
    @pl.when(col0 + (tk - 1) <= row0)
    def _():
        _update(apply_mask=False)

    # Diagonal-crossing tile: apply the causal mask.
    @pl.when(jnp.logical_and(col0 + (tk - 1) > row0, col0 <= row0 + (tq - 1)))
    def _():
        _update(apply_mask=True)

    # Fully-masked tiles (col0 > row0 + tq - 1) are skipped entirely.

    # --- per-head epilogue: normalize and fold this head into the output projection ---
    @pl.when(kv == n_kv - 1)
    def _():
        inv_l = pl.reciprocal(l_sc[...], approx=approx_recip)
        o_h = acc_sc[...] * inv_l                    # (tq, d) f32
        wp = wp_ref[...]
        if mxu_dtype is not None:
            o_h = o_h.astype(mxu_dtype)
            wp = wp.astype(mxu_dtype)
        else:
            o_h = o_h.astype(wp.dtype)
        proj_sc[...] += jnp.dot(o_h, wp, preferred_element_type=jnp.float32)

    # --- final write: lane-dense (tq, C) block of the (B, T, C) output ---
    @pl.when(jnp.logical_and(h == n_h - 1, kv == n_kv - 1))
    def _():
        o_ref[...] = (proj_sc[...] + bp_ref[...].astype(jnp.float32)).astype(o_ref.dtype)


# ---------------------------------------------------------------------------
# Full module forward
# ---------------------------------------------------------------------------
def attention_forward(x, params, n_head, scale=True, *,
                      mxu_dtype=None, approx_recip=False,
                      q_tile=256, kv_tile=256):
    B, T, C = x.shape
    d = C // n_head

    # c_attn: tiled linear over (B*T, C) @ (C, 3C)
    qkv = conv1d(x.reshape(B * T, C), params["c_attn_w"], params["c_attn_b"],
                 mxu_dtype=mxu_dtype)
    qkv = qkv.reshape(B, T, 3 * C)
    q, k, v = jnp.split(qkv, 3, axis=-1)

    # split_heads -> (B, H, T, d) for all of q/k/v (k is NOT pre-transposed to (d, T))
    q = q.reshape(B, T, n_head, d).transpose(0, 2, 1, 3)
    k = k.reshape(B, T, n_head, d).transpose(0, 2, 1, 3)
    v = v.reshape(B, T, n_head, d).transpose(0, 2, 1, 3)

    tq = _pick_tile(T, q_tile, 8)
    tk = _pick_tile(T, kv_tile, 8)
    grid = (B, T // tq, n_head, T // tk)

    kernel = functools.partial(
        _flash_attn_proj_kernel, tq=tq, tk=tk, scale=scale,
        mxu_dtype=mxu_dtype, approx_recip=approx_recip)

    # NOTE: deeper K/V pipelining (pipeline_mode=pl.Buffered(3)) is a possible extra
    # knob once per-step DMA latency is exposed; default double-buffering is used here.
    out = pl.pallas_call(
        kernel,
        out_shape=jax.ShapeDtypeStruct((B, T, C), x.dtype),
        grid=grid,
        in_specs=[
            pl.BlockSpec((None, None, tq, d), lambda b, qi, h, kv: (b, h, qi, 0)),  # q
            pl.BlockSpec((None, None, tk, d), lambda b, qi, h, kv: (b, h, kv, 0)),  # k
            pl.BlockSpec((None, None, tk, d), lambda b, qi, h, kv: (b, h, kv, 0)),  # v
            pl.BlockSpec((d, C), lambda b, qi, h, kv: (h, 0)),                      # W_proj[h]
            pl.BlockSpec((1, C), lambda b, qi, h, kv: (0, 0)),                      # b_proj
        ],
        out_specs=pl.BlockSpec((None, tq, C), lambda b, qi, h, kv: (b, qi, 0)),
        scratch_shapes=[
            pltpu.VMEM((tq, 1), jnp.float32),   # running max m
            pltpu.VMEM((tq, 1), jnp.float32),   # running sum l
            pltpu.VMEM((tq, d), jnp.float32),   # per-head accumulator
            pltpu.VMEM((tq, C), jnp.float32),   # fused c_proj accumulator
        ],
        compiler_params=pltpu.CompilerParams(
            dimension_semantics=("parallel", "parallel", "arbitrary", "arbitrary"),
            vmem_limit_bytes=32 * 1024 * 1024,
        ),
    )(q, k, v, params["c_proj_w"], params["c_proj_b"].reshape(1, C))

    return out


# ---------------------------------------------------------------------------
# Pure-JAX reference (for correctness check)
# ---------------------------------------------------------------------------
def attention_ref(x, params, n_head, scale=True):
    B, T, C = x.shape
    d = C // n_head
    qkv = x.reshape(B * T, C) @ params["c_attn_w"] + params["c_attn_b"]
    qkv = qkv.reshape(B, T, 3 * C)
    q, k, v = jnp.split(qkv, 3, axis=-1)
    q = q.reshape(B, T, n_head, d).transpose(0, 2, 1, 3)
    k = k.reshape(B, T, n_head, d).transpose(0, 2, 3, 1)
    v = v.reshape(B, T, n_head, d).transpose(0, 2, 1, 3)
    w = jnp.einsum("bhtd,bhds->bhts", q, k)
    if scale:
        w = w / math.sqrt(d)
    mask = jnp.tril(jnp.ones((T, T), dtype=bool))
    w = jnp.where(mask[None, None], w, jnp.float32(-10000.0))
    w = jax.nn.softmax(w, axis=-1)
    a = jnp.einsum("bhts,bhsd->bhtd", w, v)
    a = a.transpose(0, 2, 1, 3).reshape(B * T, C)
    return (a @ params["c_proj_w"] + params["c_proj_b"]).reshape(B, T, C)


if __name__ == "__main__":
    # Small config: nx = n_state = 32, seq = 8, n_head = 4, batch = 2
    B, T, C, H = 2, 8, 32, 4

    key = jax.random.PRNGKey(0)
    k_x, k_aw, k_pw = jax.random.split(key, 3)

    x = jax.random.normal(k_x, (B, T, C), dtype=jnp.float32)
    params = {
        # GPT-2 Conv1D init: weight ~ N(0, 0.02), bias = 0
        "c_attn_w": 0.02 * jax.random.normal(k_aw, (C, 3 * C), dtype=jnp.float32),
        "c_attn_b": jnp.zeros((3 * C,), dtype=jnp.float32),
        "c_proj_w": 0.02 * jax.random.normal(k_pw, (C, C), dtype=jnp.float32),
        "c_proj_b": jnp.zeros((C,), dtype=jnp.float32),
    }

    ref = attention_ref(x, params, n_head=H, scale=True)

    # Exact path (f32 MXU inputs, exact reciprocal): strict check vs the reference.
    out = attention_forward(x, params, n_head=H, scale=True)
    out = jax.block_until_ready(out)
    assert out.shape == (B, T, C)
    assert jnp.allclose(out, ref, rtol=1e-4, atol=1e-5), "Pallas output mismatch (exact path)"

    # Fast path (bf16 MXU inputs + approx EUP reciprocal): loose-tolerance sanity run to
    # make sure the performance configuration also compiles and runs on this TPU.
    out_fast = attention_forward(x, params, n_head=H, scale=True,
                                 mxu_dtype=jnp.bfloat16, approx_recip=True)
    out_fast = jax.block_until_ready(out_fast)
    assert jnp.allclose(out_fast, ref, rtol=5e-2, atol=1e-2), "Pallas output mismatch (fast path)"

    print("KERNEL_OK")
</pallas_src>

<mosaic_0001>
module attributes {stable_mosaic.version = 11 : i64} {
  func.func @_linear_kernel(%arg0: i32, %arg1: i32, %arg2: i32, %arg3: memref<16x32xf32, #tpu.memory_space<vmem>>, %arg4: memref<32x96xf32, #tpu.memory_space<vmem>>, %arg5: memref<1x96xf32, #tpu.memory_space<vmem>>, %arg6: memref<16x96xf32, #tpu.memory_space<vmem>>, %arg7: memref<16x96xf32, #tpu.memory_space<vmem>>) attributes {dimension_semantics = [#tpu.dimension_semantics<parallel>, #tpu.dimension_semantics<parallel>, #tpu.dimension_semantics<arbitrary>], iteration_bounds = array<i64: 1, 1, 1>, scalar_prefetch = 0 : i64, scratch_operands = 1 : i64, tpu.core_type = #tpu.core_type<tc>, window_params = [{transform_indices = @transform_0, window_bounds = array<i64: 16, 32>}, {transform_indices = @transform_1, window_bounds = array<i64: 32, 96>}, {transform_indices = @transform_2, window_bounds = array<i64: 1, 96>}, {transform_indices = @transform_3, window_bounds = array<i64: 16, 96>}]} {
    %c0_i32 = arith.constant 0 : i32
    %0 = arith.cmpi eq, %arg2, %c0_i32 : i32
    %1 = arith.extui %0 : i1 to i32
    %c0_i32_0 = arith.constant 0 : i32
    %2 = arith.cmpi ne, %1, %c0_i32_0 : i32
    scf.if %2 {
      %cst_10 = arith.constant 0.000000e+00 : f32
      %12 = vector.broadcast %cst_10 : f32 to vector<16x96xf32>
      %c0_11 = arith.constant 0 : index
      %c0_12 = arith.constant 0 : index
      %13 = vector.load %arg7[%c0_11, %c0_12] : memref<16x96xf32, #tpu.memory_space<vmem>>, vector<16x96xf32>
      tpu.vector_store %arg7[%c0_11, %c0_12], %12 {strides = array<i32>} : memref<16x96xf32, #tpu.memory_space<vmem>>, vector<16x96xf32>,
    } else {
    }
    %c0 = arith.constant 0 : index
    %c0_1 = arith.constant 0 : index
    %3 = vector.load %arg3[%c0, %c0_1] : memref<16x32xf32, #tpu.memory_space<vmem>>, vector<16x32xf32>
    %c0_2 = arith.constant 0 : index
    %c0_3 = arith.constant 0 : index
    %4 = vector.load %arg4[%c0_2, %c0_3] : memref<32x96xf32, #tpu.memory_space<vmem>>, vector<32x96xf32>
    %c0_4 = arith.constant 0 : index
    %c0_5 = arith.constant 0 : index
    %5 = vector.load %arg7[%c0_4, %c0_5] : memref<16x96xf32, #tpu.memory_space<vmem>>, vector<16x96xf32>
    %cst = arith.constant dense<0.000000e+00> : vector<16x96xf32>
    %6 = tpu.matmul %3, %4, %cst {dimension_numbers = #tpu.dot_dimension_numbers<[1], [0], [0], [1], [0, 0, 1, 1], [], []>} : vector<16x32xf32>, vector<32x96xf32>, vector<16x96xf32> -> vector<16x96xf32>
    %7 = arith.addf %5, %6 : vector<16x96xf32>
    %c0_6 = arith.constant 0 : index
    %c0_7 = arith.constant 0 : index
    %8 = vector.load %arg7[%c0_6, %c0_7] : memref<16x96xf32, #tpu.memory_space<vmem>>, vector<16x96xf32>
    tpu.vector_store %arg7[%c0_6, %c0_7], %7 {strides = array<i32>} : memref<16x96xf32, #tpu.memory_space<vmem>>, vector<16x96xf32>,
    %c0_i32_8 = arith.constant 0 : i32
    %9 = arith.cmpi eq, %arg2, %c0_i32_8 : i32
    %10 = arith.extui %9 : i1 to i32
    %c0_i32_9 = arith.constant 0 : i32
    %11 = arith.cmpi ne, %10, %c0_i32_9 : i32
    scf.if %11 {
      %c0_10 = arith.constant 0 : index
      %c0_11 = arith.constant 0 : index
      %12 = vector.load %arg7[%c0_10, %c0_11] : memref<16x96xf32, #tpu.memory_space<vmem>>, vector<16x96xf32>
      %c0_12 = arith.constant 0 : index
      %c0_13 = arith.constant 0 : index
      %13 = vector.load %arg5[%c0_12, %c0_13] : memref<1x96xf32, #tpu.memory_space<vmem>>, vector<1x96xf32>
      %14 = vector.broadcast %13 : vector<1x96xf32> to vector<16x96xf32>
      %15 = arith.addf %12, %14 : vector<16x96xf32>
      %c0_14 = arith.constant 0 : index
      %c0_15 = arith.constant 0 : index
      %16 = vector.load %arg6[%c0_14, %c0_15] : memref<16x96xf32, #tpu.memory_space<vmem>>, vector<16x96xf32>
      tpu.vector_store %arg6[%c0_14, %c0_15], %15 {strides = array<i32>} : memref<16x96xf32, #tpu.memory_space<vmem>>, vector<16x96xf32>,
    } else {
    }
    return
  }
  func.func @transform_0(%arg0: i32, %arg1: i32, %arg2: i32) -> (i32, i32) {
    %c0_i32 = arith.constant 0 : i32
    return %arg0, %arg2 : i32, i32
  }
  func.func @transform_1(%arg0: i32, %arg1: i32, %arg2: i32) -> (i32, i32) {
    %c0_i32 = arith.constant 0 : i32
    return %arg2, %arg1 : i32, i32
  }
  func.func @transform_2(%arg0: i32, %arg1: i32, %arg2: i32) -> (i32, i32) {
    %c0_i32 = arith.constant 0 : i32
    %c0_i32_0 = arith.constant 0 : i32
    return %c0_i32, %arg1 : i32, i32
  }
  func.func @transform_3(%arg0: i32, %arg1: i32, %arg2: i32) -> (i32, i32) {
    %c0_i32 = arith.constant 0 : i32
    return %arg0, %arg1 : i32, i32
  }
}

</mosaic_0001>

<bundles_post_ra>
// kernel: tpu_custom_call.1
= control target key start
LH: loop header
LB: loop body
LE: loop exit
PB: predicated region body
PF: predicated region fallthrough
CT: control target
= control target key end

     0   :  { %8 = vsyncpa [#allocation4], 0  ;;  %s326_s0 = inlined_call_operand.hbm [shape: f32[16,32], index: 0, kind: input, shape index: {}]   ;;  %s327_s1 = inlined_call_operand.hbm [shape: f32[32,96], index: 1, kind: input, shape index: {}]   ;;  %s328_s2 = inlined_call_operand.vmem [shape: f32[1,96], index: 2, kind: input, shape index: {}]   ;;  %s329_s3 = inlined_call_operand.hbm [shape: f32[16,96], index: 3, kind: output, shape index: {}]  }
   0x1   :  { %9 = vsyncpa [#allocation7], 0 }
   0x2   :  { %10 = vsyncpa [#allocation5], 0  ;;  %s271_s12 = smov [#allocation3]  }
   0x3   :  { %s16_s13 = sshll.u32 %s271_s12, 4  ;;  %s17_s13 = int_to_ptr.vmem [resolvable:$true] %s16_s13 }
   0x4   :  { %s213_s14 = scalar_lea.vmem %s17_s13, 256  ;;  %p218_p1 = scmp.lt.s32.totalorder %s17_s13, %s17_s13 }
   0x5   :  { %p214_p0 = scmp.ne.s32.totalorder %s17_s13, %s213_s14  ;;  %p219_p2 = scmp.lt.s32.totalorder %s213_s14, %s213_s14 }
   0x7   :  { %p220_p3 = por %p219_p2, %p218_p1 }
   0x9   :  { %p221_p4 = pnand %p220_p3, %p214_p0 }
   0xb   :  { %224 = shalt.err (!%p221_p4)
}
   0xc   :  { %s272_s15 = smov 128   ;;  %s273_s16 = smov 8  }
   0xd   :  { %22 = dma.hbm_to_vmem [thread:$0]  %s326_s0, 256, %s17_s13, [#allocation4], %s272_s15, %s272_s15, %s273_s16  }
   0xe   :  { %s274_s19 = smov [#allocation6]  }
   0xf   :  { %s28_s20 = sshll.u32 %s274_s19, 4  ;;  %s29_s20 = int_to_ptr.vmem [resolvable:$true] %s28_s20 }
  0x10   :  { %s233_s21 = scalar_lea.vmem %s29_s20, 512  ;;  %p238_p6 = scmp.lt.s32.totalorder %s29_s20, %s29_s20 }
  0x11   :  { %p234_p5 = scmp.ne.s32.totalorder %s29_s20, %s233_s21  ;;  %p239_p7 = scmp.lt.s32.totalorder %s233_s21, %s233_s21 }
  0x13   :  { %p240_p8 = por %p239_p7, %p238_p6 }
  0x15   :  { %p241_p9 = pnand %p240_p8, %p234_p5 }
  0x17   :  { %244 = shalt.err (!%p241_p9)
}
  0x18   :  { %34 = dma.hbm_to_vmem [thread:$0]  %s327_s1, 512, %s29_s20, [#allocation7], %s272_s15, %s272_s15, %s273_s16  }
  0x19   :  { %265 = dma.done.wait [#allocation4], 256  }
  0x1a   :  { %266 = vsyncadd [#allocation4], 4294967040 }
  0x1b   :  { %267 = dma.done.wait [#allocation7], 512  }
  0x1c   :  { %268 = vsyncadd [#allocation7], 4294966784  ;;  %vm47_vm0 = vcmask 785408   ;;  %v275_v0 = vmov 0.0   ;;  %vm58_vm1 = vcmask 261120   ;;  %v55_v1 = vld [vmem:[#allocation6 + $0x18] sm:$0xff] }
  0x1d   :  { %49 = vst.msk [vmem:[#allocation2 + $0x8] sm:$0xff] %vm47_vm0, %v275_v0  ;;  %48 = vst.msk [vmem:[#allocation2] sm:$0xff] %vm47_vm0, %v275_v0  ;;  %v54_v2 = vld [vmem:[#allocation6 + $0x10] sm:$0xff]  ;;  %188 = vmatprep.subr.mxu0 %v55_v1  ;;  %v53_v4 = vld [vmem:[#allocation6 + $0x8] sm:$0xff]  ;;  %s276_s24 = smov [#allocation8]  }
  0x1e   :  { %v50_v3 = vld [vmem:[#allocation3] sm:$0xff]  ;;  %189 = vmatpush3.msra.mxu0 %v55_v1  ;;  %v52_v5 = vld [vmem:[#allocation6] sm:$0xff]  ;;  %v51_v6 = vld [vmem:[#allocation3 + $0x8] sm:$0xff]  ;;  %s166_s25 = sshll.u32 %s276_s24, 4  ;;  %s167_s25 = int_to_ptr.vmem [resolvable:$true] %s166_s25 }
  0x1f   :  { %196 = vmatprep.mubr.msk.f32.mxu0 %vm58_vm1, %v50_v3  ;;  %190 = vmatprep.subr.mxu0 %v54_v2  ;;  %v181_v13 = vld [vmem:[%s328_s2] ss:$0 sm:$0xff]  ;;  %s245_s26 = scalar_lea.vmem %s167_s25, 256  ;;  %p250_p11 = scmp.lt.s32.totalorder %s167_s25, %s167_s25 }
  0x20   :  { %191 = vmatpush3.msra.mxu0 %v54_v2  ;;  %p246_p10 = scmp.ne.s32.totalorder %s167_s25, %s245_s26  ;;  %p251_p12 = scmp.lt.s32.totalorder %s245_s26, %s245_s26 }
  0x21   :  { %192 = vmatprep.subr.mxu0 %v53_v4 }
  0x22   :  { %193 = vmatpush3.msra.mxu0 %v53_v4  ;;  %p252_p13 = por %p251_p12, %p250_p11 }
  0x23   :  { %194 = vmatprep.subr.mxu0 %v52_v5 }
  0x24   :  { %195 = vmatpush3.msra.mxu0 %v52_v5  ;;  %v57_v7 = vld [vmem:[#allocation2 + $0x8] sm:$0xff]  ;;  %v56_v9 = vld [vmem:[#allocation2] sm:$0xff]  ;;  %p253_p0 = pnand %p252_p13, %p246_p10 }
  0x25   :  { %197 = vmatmul.mubr.msk.f32.vlgmr.msra.gmra.mxu0 %vm58_vm1, %v51_v6 }
  0xe5   :  { %v198_v8 = vpop.f32.mrf.mxu0 }
  0xe6   :  { %v141_v10 = vadd.f32 %v198_v8, %v57_v7 }
  0xe7   :  { %v131_v11 = vpop.f32.mrf.mxu0 }
  0xe8   :  { %144 = vst.msk [vmem:[#allocation2 + $0x8] sm:$0xff] %vm47_vm0, %v141_v10  ;;  %v140_v12 = vadd.f32 %v131_v11, %v56_v9 }
  0xea   :  { %143 = vst.msk [vmem:[#allocation2] sm:$0xff] %vm47_vm0, %v140_v12 }
  0xef   :  { %v149_v14 = vld [vmem:[#allocation2 + $0x8] sm:$0xff] }
  0xf0   :  { %v158_v15 = vadd.f32 %v181_v13, %v149_v14 }
  0xf1   :  { %v148_v16 = vld [vmem:[#allocation2] sm:$0xff] }
  0xf2   :  { %v157_v17 = vadd.f32 %v181_v13, %v148_v16  ;;  %160 = vst.msk [vmem:[#allocation8 + $0x8] sm:$0xff] %vm47_vm0, %v158_v15 }
  0xf4   :  { %159 = vst.msk [vmem:[#allocation8] sm:$0xff] %vm47_vm0, %v157_v17 }
  0xf5   :  { %256 = shalt.err (!%p253_p0)
}
  0xf6   :  { %172 = dma.vmem_to_hbm [thread:$0]  %s167_s25, 256, %s329_s3, [#allocation5], %s272_s15, %s272_s15, %s273_s16  }
  0xf7   :  { %269 = dma.done.wait [#allocation5], 256  }
  0xf8   :  { %270 = vsyncadd [#allocation5], 4294967040 }
  0xf9   :  { %176 = vsyncpa [#allocation4], 1 }
  0xfa   :  { %177 = vsyncpa [#allocation7], 1 }
  0xfb   :  { %178 = vsyncpa [#allocation5], 1 }

</bundles_post_ra>
